<compile_context>
chip_gen: v5e
topology: v5e:2x2
jax: 0.10.0
libtpu: 0.0.40
codegen_flags: <defaults>
</compile_context>

<pallas_src>
import jax
import jax.numpy as jnp
from jax.experimental import pallas as pl
from jax.experimental.pallas import tpu as pltpu

BN_EPS = 1e-5
TILE_N_TARGET = 4096   # rows per grid step; ~16 MiB peak VMEM at in_dim=16


def _round_up(n, m):
    return ((n + m - 1) // m) * m


def mlpfeat_kernel(stats_ref, x_ref, w1_ref, b1_ref, w2_ref, b2_ref, o_ref):
    """Fused: (global-stat) batch-norm -> fc1 -> ReLU -> fc2 on one row tile.

    stats_ref: SMEM (2,) f32      [mean, rstd] over the whole input tensor
    x_ref    : (TILE_N, F)        row tile of the flattened input
    w1_ref   : (H, F) bf16        fc1 weight (PyTorch layout, no transpose)
    b1_ref   : (1, H) f32
    w2_ref   : (F, H) bf16        fc2 weight (PyTorch layout)
    b2_ref   : (1, F) f32
    o_ref    : (TILE_N, F)
    """
    mean = stats_ref[0]
    rstd = stats_ref[1]

    # --- BatchNorm (global batch stats, gamma=1, beta=0); elementwise in f32.
    xn = (x_ref[...].astype(jnp.float32) - mean) * rstd

    # Contract the last dims of both operands == x @ W.T (no weight transpose).
    dims = (((1,), (1,)), ((), ()))

    # --- fc1 + bias + ReLU (bf16 operands, f32 MXU accumulation)
    h = jax.lax.dot_general(
        xn.astype(jnp.bfloat16), w1_ref[...],
        dimension_numbers=dims, preferred_element_type=jnp.float32)
    h = jnp.maximum(h + b1_ref[...], 0.0)

    # drop1: identity (eval mode)

    # --- fc2 + bias
    out = jax.lax.dot_general(
        h.astype(jnp.bfloat16), w2_ref[...],
        dimension_numbers=dims, preferred_element_type=jnp.float32)
    out = out + b2_ref[...]

    # drop2: identity (eval mode)
    o_ref[...] = out.astype(o_ref.dtype)


def mlpfeat_forward(x, w1, b1, w2, b2):
    """x: (B, S, in_dim); w1: (hidden, in_dim); b1: (hidden,);
       w2: (in_dim, hidden); b2: (in_dim,)   (PyTorch Linear layout)."""
    B, S, F = x.shape
    H = w1.shape[0]
    N = B * S

    # --- Global BN statistics (training-mode batch stats) in ONE fused pass.
    xf32 = x.astype(jnp.float32)
    mean = jnp.mean(xf32)
    meansq = jnp.mean(xf32 * xf32)
    var = jnp.maximum(meansq - mean * mean, 0.0)     # biased variance (BN)
    rstd = jax.lax.rsqrt(var + BN_EPS)
    stats = jnp.stack([mean, rstd]).astype(jnp.float32)   # (2,) -> SMEM

    # --- Row tiling: tile_n multiple of 8; partial last block masked by Pallas.
    tile_n = min(TILE_N_TARGET, _round_up(N, 8))
    grid = (pl.cdiv(N, tile_n),)

    # --- No feature/row padding: blocks use the full (small) feature dims.
    x2d = x.reshape(N, F)                                   # view, no copy
    w1_b = w1.astype(jnp.bfloat16)
    w2_b = w2.astype(jnp.bfloat16)
    b1_r = b1.reshape(1, H).astype(jnp.float32)
    b2_r = b2.reshape(1, F).astype(jnp.float32)

    itemsize = jnp.dtype(x.dtype).itemsize
    cost = pl.CostEstimate(
        flops=4 * N * F * H,
        transcendentals=0,
        bytes_accessed=(2 * N * F * itemsize           # x in + out
                        + (w1_b.size + w2_b.size) * 2  # bf16 weights
                        + (b1_r.size + b2_r.size) * 4),  # f32 biases
    )

    out2d = pl.pallas_call(
        mlpfeat_kernel,
        out_shape=jax.ShapeDtypeStruct((N, F), x.dtype),
        grid=grid,
        in_specs=[
            pl.BlockSpec(memory_space=pltpu.MemorySpace.SMEM),   # stats
            pl.BlockSpec((tile_n, F), lambda i: (i, 0)),         # x rows
            pl.BlockSpec((H, F), lambda i: (0, 0)),              # w1 (resident)
            pl.BlockSpec((1, H), lambda i: (0, 0)),              # b1
            pl.BlockSpec((F, H), lambda i: (0, 0)),              # w2 (resident)
            pl.BlockSpec((1, F), lambda i: (0, 0)),              # b2
        ],
        out_specs=pl.BlockSpec((tile_n, F), lambda i: (i, 0)),
        compiler_params=pltpu.CompilerParams(
            dimension_semantics=("parallel",),        # megacore split on v7x
            vmem_limit_bytes=32 * 1024 * 1024,        # safe on v5e/v6e/v7x
        ),
        cost_estimate=cost,
    )(stats, x2d, w1_b, b1_r, w2_b, b2_r)

    return out2d.reshape(B, S, F)


def mlpfeat_reference(x, w1, b1, w2, b2):
    """Pure-JAX f32 reference mirroring the torch forward (eval-mode dropout)."""
    xf = x.astype(jnp.float32)
    mean = jnp.mean(xf)
    var = jnp.mean((xf - mean) ** 2)
    xn = (xf - mean) / jnp.sqrt(var + BN_EPS)
    h = jnp.maximum(xn @ w1.T + b1, 0.0)
    return h @ w2.T + b2


if __name__ == "__main__":
    # Small shapes consistent with the module: x is (batch, seq, in_dim).
    B, S, IN_DIM, HIDDEN = 2, 8, 16, 32

    key = jax.random.PRNGKey(0)
    kx, k1, k2, k3, k4 = jax.random.split(key, 5)

    x = jax.random.normal(kx, (B, S, IN_DIM), dtype=jnp.float32)

    # Deterministic PyTorch-style Linear init: U(-1/sqrt(fan_in), 1/sqrt(fan_in))
    bound1 = 1.0 / (IN_DIM ** 0.5)
    w1 = jax.random.uniform(k1, (HIDDEN, IN_DIM), jnp.float32, -bound1, bound1)
    b1 = jax.random.uniform(k2, (HIDDEN,), jnp.float32, -bound1, bound1)
    bound2 = 1.0 / (HIDDEN ** 0.5)
    w2 = jax.random.uniform(k3, (IN_DIM, HIDDEN), jnp.float32, -bound2, bound2)
    b2 = jax.random.uniform(k4, (IN_DIM,), jnp.float32, -bound2, bound2)

    fwd = jax.jit(mlpfeat_forward)
    out = jax.block_until_ready(fwd(x, w1, b1, w2, b2))

    ref = mlpfeat_reference(x, w1, b1, w2, b2)
    assert out.shape == (B, S, IN_DIM)
    # bf16 MXU operands (f32 accumulation) -> slightly looser tolerance vs f32 ref.
    max_err = float(jnp.max(jnp.abs(out - ref)))
    assert jnp.allclose(out, ref, atol=5e-2, rtol=5e-2), \
        f"mismatch vs reference (max abs err {max_err})"

    print("KERNEL_OK")
</pallas_src>

<mosaic_0001>
module attributes {stable_mosaic.version = 11 : i64} {
  func.func @mlpfeat_kernel(%arg0: i32, %arg1: memref<2xf32, #tpu.memory_space<smem>>, %arg2: memref<16x16xf32, #tpu.memory_space<vmem>>, %arg3: memref<32x16xbf16, #tpu.memory_space<vmem>>, %arg4: memref<1x32xf32, #tpu.memory_space<vmem>>, %arg5: memref<16x32xbf16, #tpu.memory_space<vmem>>, %arg6: memref<1x16xf32, #tpu.memory_space<vmem>>, %arg7: memref<16x16xf32, #tpu.memory_space<vmem>>) attributes {dimension_semantics = [#tpu.dimension_semantics<parallel>], iteration_bounds = array<i64: 1>, scalar_prefetch = 0 : i64, scratch_operands = 0 : i64, tpu.core_type = #tpu.core_type<tc>, window_params = [{transform_indices = @transform_0, window_bounds = array<i64: 2>}, {transform_indices = @transform_1, window_bounds = array<i64: 16, 16>}, {pipeline_mode = #tpu.pipeline_mode<synchronous>, transform_indices = @transform_2, window_bounds = array<i64: 32, 16>}, {pipeline_mode = #tpu.pipeline_mode<synchronous>, transform_indices = @transform_3, window_bounds = array<i64: 1, 32>}, {pipeline_mode = #tpu.pipeline_mode<synchronous>, transform_indices = @transform_4, window_bounds = array<i64: 16, 32>}, {pipeline_mode = #tpu.pipeline_mode<synchronous>, transform_indices = @transform_5, window_bounds = array<i64: 1, 16>}, {transform_indices = @transform_6, window_bounds = array<i64: 16, 16>}]} {
    %c0 = arith.constant 0 : index
    %0 = memref.load %arg1[%c0] : memref<2xf32, #tpu.memory_space<smem>>
    %c1 = arith.constant 1 : index
    %1 = memref.load %arg1[%c1] : memref<2xf32, #tpu.memory_space<smem>>
    %c0_0 = arith.constant 0 : index
    %c0_1 = arith.constant 0 : index
    %2 = vector.load %arg2[%c0_0, %c0_1] : memref<16x16xf32, #tpu.memory_space<vmem>>, vector<16x16xf32>
    %3 = vector.broadcast %0 : f32 to vector<16x16xf32>
    %4 = arith.subf %2, %3 : vector<16x16xf32>
    %5 = vector.broadcast %1 : f32 to vector<16x16xf32>
    %6 = arith.mulf %4, %5 : vector<16x16xf32>
    %7 = arith.truncf %6 : vector<16x16xf32> to vector<16x16xbf16>
    %c0_2 = arith.constant 0 : index
    %c0_3 = arith.constant 0 : index
    %8 = vector.load %arg3[%c0_2, %c0_3] : memref<32x16xbf16, #tpu.memory_space<vmem>>, vector<32x16xbf16>
    %cst = arith.constant dense<0.000000e+00> : vector<16x32xf32>
    %9 = tpu.matmul %7, %8, %cst {dimension_numbers = #tpu.dot_dimension_numbers<[1], [1], [0], [0], [0, 0, 1, 0], [], []>} : vector<16x16xbf16>, vector<32x16xbf16>, vector<16x32xf32> -> vector<16x32xf32>
    %c0_4 = arith.constant 0 : index
    %c0_5 = arith.constant 0 : index
    %10 = vector.load %arg4[%c0_4, %c0_5] : memref<1x32xf32, #tpu.memory_space<vmem>>, vector<1x32xf32>
    %11 = vector.broadcast %10 : vector<1x32xf32> to vector<16x32xf32>
    %12 = arith.addf %9, %11 : vector<16x32xf32>
    %cst_6 = arith.constant 0.000000e+00 : f32
    %13 = vector.broadcast %cst_6 : f32 to vector<16x32xf32>
    %14 = arith.maximumf %12, %13 : vector<16x32xf32>
    %15 = arith.truncf %14 : vector<16x32xf32> to vector<16x32xbf16>
    %c0_7 = arith.constant 0 : index
    %c0_8 = arith.constant 0 : index
    %16 = vector.load %arg5[%c0_7, %c0_8] : memref<16x32xbf16, #tpu.memory_space<vmem>>, vector<16x32xbf16>
    %cst_9 = arith.constant dense<0.000000e+00> : vector<16x16xf32>
    %17 = tpu.matmul %15, %16, %cst_9 {dimension_numbers = #tpu.dot_dimension_numbers<[1], [1], [0], [0], [0, 0, 1, 0], [], []>} : vector<16x32xbf16>, vector<16x32xbf16>, vector<16x16xf32> -> vector<16x16xf32>
    %c0_10 = arith.constant 0 : index
    %c0_11 = arith.constant 0 : index
    %18 = vector.load %arg6[%c0_10, %c0_11] : memref<1x16xf32, #tpu.memory_space<vmem>>, vector<1x16xf32>
    %19 = vector.broadcast %18 : vector<1x16xf32> to vector<16x16xf32>
    %20 = arith.addf %17, %19 : vector<16x16xf32>
    %c0_12 = arith.constant 0 : index
    %c0_13 = arith.constant 0 : index
    %21 = vector.load %arg7[%c0_12, %c0_13] : memref<16x16xf32, #tpu.memory_space<vmem>>, vector<16x16xf32>
    tpu.vector_store %arg7[%c0_12, %c0_13], %20 {strides = array<i32>} : memref<16x16xf32, #tpu.memory_space<vmem>>, vector<16x16xf32>,
    return
  }
  func.func @transform_0(%arg0: i32) -> i32 {
    %c0_i32 = arith.constant 0 : i32
    %c0_i32_0 = arith.constant 0 : i32
    return %c0_i32 : i32
  }
  func.func @transform_1(%arg0: i32) -> (i32, i32) {
    %c0_i32 = arith.constant 0 : i32
    %c0_i32_0 = arith.constant 0 : i32
    return %arg0, %c0_i32 : i32, i32
  }
  func.func @transform_2(%arg0: i32) -> (i32, i32) {
    %c0_i32 = arith.constant 0 : i32
    %c0_i32_0 = arith.constant 0 : i32
    %c0_i32_1 = arith.constant 0 : i32
    return %c0_i32, %c0_i32_0 : i32, i32
  }
  func.func @transform_3(%arg0: i32) -> (i32, i32) {
    %c0_i32 = arith.constant 0 : i32
    %c0_i32_0 = arith.constant 0 : i32
    %c0_i32_1 = arith.constant 0 : i32
    return %c0_i32, %c0_i32_0 : i32, i32
  }
  func.func @transform_4(%arg0: i32) -> (i32, i32) {
    %c0_i32 = arith.constant 0 : i32
    %c0_i32_0 = arith.constant 0 : i32
    %c0_i32_1 = arith.constant 0 : i32
    return %c0_i32, %c0_i32_0 : i32, i32
  }
  func.func @transform_5(%arg0: i32) -> (i32, i32) {
    %c0_i32 = arith.constant 0 : i32
    %c0_i32_0 = arith.constant 0 : i32
    %c0_i32_1 = arith.constant 0 : i32
    return %c0_i32, %c0_i32_0 : i32, i32
  }
  func.func @transform_6(%arg0: i32) -> (i32, i32) {
    %c0_i32 = arith.constant 0 : i32
    %c0_i32_0 = arith.constant 0 : i32
    return %arg0, %c0_i32 : i32, i32
  }
}

</mosaic_0001>

<bundles_post_ra>
// kernel: mlpfeat_forward.1
= control target key start
LH: loop header
LB: loop body
LE: loop exit
PB: predicated region body
PF: predicated region fallthrough
CT: control target
= control target key end

     0   :  { %11 = vsyncpa [#allocation4], 0  ;;  %s282_s0 = inlined_call_operand.vmem [shape: f32[2], index: 0, kind: input, shape index: {}]   ;;  %s283_s1 = inlined_call_operand.vmem [shape: f32[16,16], index: 1, kind: input, shape index: {}]   ;;  %s284_s2 = inlined_call_operand.vmem [shape: bf16[32,16], index: 2, kind: input, shape index: {}]   ;;  %s285_s3 = inlined_call_operand.vmem [shape: f32[1,32], index: 3, kind: input, shape index: {}]   ;;  %s286_s4 = inlined_call_operand.vmem [shape: bf16[16,32], index: 4, kind: input, shape index: {}]   ;;  %s287_s5 = inlined_call_operand.vmem [shape: f32[1,16], index: 5, kind: input, shape index: {}]   ;;  %s288_s6 = inlined_call_operand.hbm [shape: f32[16,16], index: 6, kind: output, shape index: {}]  }
   0x1   :  { %12 = vsyncpa [#allocation3], 0  ;;  %s18_s23 = sshll.u32 %s282_s0, 4  ;;  %s211_s24 = smov [#allocation2]   ;;  %s19_s23 = int_to_ptr.vmem [resolvable:$true] %s18_s23 }
   0x2   :  { %21 = dma.vmem_to_smem %s19_s23, 16, %s211_s24, [#allocation4]  }
   0x3   :  { %207 = dma.done.wait [#allocation4], 16  }
   0x4   :  { %208 = vsyncadd [#allocation4], 4294967280 }
   0x5   :  { %36 = sfence }
   0x6   :  { %v163_v0 = vld [vmem:[%s284_s2 + $0x8] sm:$0xff]  ;;  %vm67_vm0 = vcmask 130048   ;;  %s38_s27 = sld [smem:[#allocation2]]  ;;  %v162_v2 = vld [vmem:[%s284_s2] sm:$0xff]  ;;  %vm105_vm1 = vcmask 261120   ;;  %s213_s17 = smov 128  }
   0x7   :  { %s147_s28 = sld [smem:[#allocation2 + $0x1]]  ;;  %v75_v1 = vsel %vm67_vm0, %v163_v0, 0  ;;  %v40_v3 = vld [vmem:[%s283_s1] sm:$0xff]  ;;  %v41_v4 = vld [vmem:[%s283_s1 + $0x8] sm:$0xff]  ;;  %v72_v9 = vsel %vm67_vm0, %v162_v2, 0  ;;  %s214_s18 = smov 8  }
   0x8   :  { %83 = vmatpush.bf16.xpose.msra.mxu0 %v75_v1  ;;  %v164_v13 = vld [vmem:[%s286_s4] sm:$0xff]  ;;  %s212_s4 = smov [#allocation5]  }
   0x9   :  { %v110_v14 = vsel %vm105_vm1, %v164_v13, 0  ;;  %v169_v16 = vld [vmem:[%s285_s3] ss:$0 sm:$0xff]  ;;  %s132_s14 = sshll.u32 %s212_s4, 4  ;;  %s134_s3 = sshll.u32 %s288_s6, 4  ;;  %s133_s14 = int_to_ptr.vmem [resolvable:$true] %s132_s14  ;;  %s135_s3 = int_to_ptr.hbm [resolvable:$true] %s134_s3 }
   0xa   :  { %119 = vmatpush.bf16.xpose.msra.mxu1 %v110_v14  ;;  %v170_v23 = vld [vmem:[%s287_s5] ss:$0 sm:$0xff] }
   0xc   :  { %v42_v5 = vstv %s38_s27 }
   0xd   :  { %v43_v6 = vsub.f32 %v40_v3, %v42_v5  ;;  %v44_v7 = vsub.f32 %v41_v4, %v42_v5  ;;  %v45_v8 = vstv %s147_s28 }
   0xf   :  { %v46_v10 = vmul.f32 %v45_v8, %v43_v6  ;;  %v47_v11 = vmul.f32 %v45_v8, %v44_v7 }
  0x10   :  { %84 = vmatpush.bf16.xpose.msra.mxu0 %v72_v9 }
  0x11   :  { %v48_v12 = vpack.c.bf16 %v47_v11, %v46_v10 }
  0x17   :  { %156 = vmatmul.msk.bf16.vlgmr.msra.gmra.mxu0 %vm67_vm0, %v48_v12 }
  0x94   :  { %v86_v15 = vpop.f32.mrf.mxu0 }
  0x95   :  { %v87_v17 = vadd.f32 %v169_v16, %v86_v15 }
  0x97   :  { %v91_v20 = vmax.f32 %v87_v17, 0.0 }
  0x9c   :  { %v88_v18 = vpop.f32.mrf.mxu0 }
  0x9d   :  { %v89_v19 = vadd.f32 %v169_v16, %v88_v18 }
  0x9f   :  { %v92_v21 = vmax.f32 %v89_v19, 0.0 }
  0xa1   :  { %v93_v22 = vpack.c.bf16 %v92_v21, %v91_v20 }
  0xa3   :  { %161 = vmatmul.msk.bf16.vlgmr.msra.gmra.mxu1 %vm105_vm1, %v93_v22 }
 0x120   :  { %v121_v24 = vpop.f32.mrf.mxu1 }
 0x121   :  { %v122_v25 = vadd.f32 %v170_v23, %v121_v24 }
 0x123   :  { %126 = vst.msk [vmem:[#allocation5] sm:$0xff] %vm67_vm0, %v122_v25 }
 0x128   :  { %v123_v26 = vpop.f32.mrf.mxu1 }
 0x129   :  { %v124_v27 = vadd.f32 %v170_v23, %v123_v26 }
 0x12b   :  { %127 = vst.msk [vmem:[#allocation5 + $0x8] sm:$0xff] %vm67_vm0, %v124_v27 }
 0x12c   :  { %140 = dma.vmem_to_hbm [thread:$0]  %s133_s14, 256, %s135_s3, [#allocation3], %s213_s17, %s213_s17, %s214_s18  }
 0x12d   :  { %209 = dma.done.wait [#allocation3], 256  }
 0x12e   :  { %210 = vsyncadd [#allocation3], 4294967040 }
 0x12f   :  { %145 = vsyncpa [#allocation3], 1 }
 0x130   :  { %146 = vsyncpa [#allocation4], 1 }

</bundles_post_ra>
